<compile_context>
chip_gen: v5e
topology: v5e:2x2
jax: 0.10.0
libtpu: 0.0.40
codegen_flags: <defaults>
</compile_context>

<pallas_src>
import jax
import jax.numpy as jnp
from jax.experimental import pallas as pl
from jax.experimental.pallas import tpu as pltpu


# ----------------------------- Pallas kernel ------------------------------- #
def _condition_mask_kernel(
    obsmask_ref,   # (nb, 2K, L)   observed_data ++ target_mask block
    temb_ref,      # (nb, L, 128)  time_embed block (native layout)
    feat_ref,      # (nb, F, L)    feature_embed block
    vtime_ref,     # (1, 128)      folded final@time weights   (grid const)
    vfeat_ref,     # (F, 1)        folded final@feature weights (grid const)
    resw_ref,      # (1, L)        valid_mask * v_stat_res / K  (grid const)
    repmat_ref,    # (L, out_c)    lane-replication matrix      (grid const)
    scal_ref,      # (3,) SMEM     [v_stat_mean, v_stat_std, bias]
    out_ref,       # (nb, out_r, out_c)  lane-dense output block
):
    nb, k2, L = obsmask_ref.shape
    K = k2 // 2
    out_r, out_c = out_ref.shape[1], out_ref.shape[2]

    obs = obsmask_ref[:, :K, :]          # (nb, K, L)
    tmask = obsmask_ref[:, K:, :]        # (nb, K, L)

    vs_mean = scal_ref[0]
    vs_std = scal_ref[1]
    bias = scal_ref[2]

    # masked per-position statistics over the K axis (exact division).
    denom = jnp.sum(tmask, axis=1) + 1e-8                        # (nb, L)
    masked = obs * tmask
    mean = jnp.sum(masked, axis=1) / denom                       # (nb, L)
    var = jnp.sum((masked - mean[:, None, :]) ** 2, axis=1) / denom
    std = jnp.sqrt(var)                                          # (nb, L)

    # window-5 rolling-mean residual averaged over K:
    #   (1/K) * sum_k (obs - rolling) == (colsum - winsum/5) / K on interior
    # lanes.  resw_ref already folds valid_mask * v_stat_res / K, so border
    # lanes (and any circular wraparound) are zeroed.
    colsum = jnp.sum(obs, axis=1)                                # (nb, L)
    winsum = (colsum
              + pltpu.roll(colsum, shift=1, axis=1)
              + pltpu.roll(colsum, shift=2, axis=1)
              + pltpu.roll(colsum, shift=L - 1, axis=1)          # == shift -1
              + pltpu.roll(colsum, shift=L - 2, axis=1))         # == shift -2
    res_term = resw_ref[...] * (colsum - 0.2 * winsum)           # (nb, L)

    # final_proj folded into the upstream projections (done on the host):
    #   scalar[b,l] = v_time . temb[b,l,:] + v_feat . feat[b,:,l]
    #                 + vs_mean*mean + vs_std*std + v_res*residual + bias
    tproj = jnp.sum(temb_ref[...] * vtime_ref[...], axis=-1)     # (nb, L)
    fproj = jnp.sum(feat_ref[...] * vfeat_ref[...], axis=1)      # (nb, L)
    scalar = tproj + fproj + vs_mean * mean + vs_std * std + res_term + bias

    # Lane-dense replication: one small MXU dot replicates the (nb, L) scalar
    # into full out_c-lane rows; mask_embed is (channel, K)-independent, so
    # the rest is a sublane broadcast -> unmasked 128-lane stores.
    lane_row = jnp.dot(scalar, repmat_ref[...],
                       preferred_element_type=jnp.float32)       # (nb, out_c)
    out_ref[...] = jnp.broadcast_to(lane_row[:, None, :], (nb, out_r, out_c))


# ------------------------------ host wrapper -------------------------------- #
def _pick_batches_per_step(B, K, L, F, out_r, out_c, vmem_budget_bytes=8 << 20):
    """Largest divisor of B whose double-buffered, (8,128)-padded blocks fit a
    conservative VMEM budget (safe on v5e 16 MiB scoped default and v7x), and
    keeps the grid-step count even (or 1) so v7x's 2 TCs split the grid."""
    def padded_bytes(rows, cols):
        return (-(-rows // 8) * 8) * (-(-cols // 128) * 128) * 4

    per_batch = (padded_bytes(2 * K, L)        # observed_data ++ target_mask
                 + padded_bytes(L, 128)        # time_embed (native layout)
                 + padded_bytes(F, L)          # feature_embed
                 + padded_bytes(out_r, out_c)) # output block
    const_bytes = (padded_bytes(1, 128) + padded_bytes(F, 1)
                   + padded_bytes(1, L) + padded_bytes(L, out_c))
    best = 1
    for nb in range(1, B + 1):
        if B % nb:
            continue
        if 2 * nb * per_batch + const_bytes > vmem_budget_bytes:
            continue
        steps = B // nb
        if steps > 1 and steps % 2 == 1:
            continue                           # odd step count idles a v7x core
        best = nb
    return best


def condition_mask_forward(observed_data, x_mask, cond_mask, target_mask,
                           time_embed, feature_embed, params, *, channels=16):
    # x_mask / cond_mask only feed `context_info`, which is dead code in the
    # reference forward (it never reaches the returned tensor).
    del x_mask, cond_mask
    B, K, L = observed_data.shape
    F = feature_embed.shape[1]
    C2 = 2 * channels
    te_out = params["time_w"].shape[0]     # time_emb_dim
    fe_out = params["feat_w"].shape[0]     # feature_emb_dim
    te_in = params["time_w"].shape[1]      # 128
    assert L >= 5, "window-5 rolling mean (torch unfold) requires L >= 5"

    # --- fold final_proj into the upstream projections (host, once) ---------
    wf = params["fin_w"]                                           # (1, te+fe+te)
    wf_t = wf[:, :te_out]
    wf_f = wf[:, te_out:te_out + fe_out]
    wf_s = wf[:, te_out + fe_out:]
    v_time = (wf_t @ params["time_w"]).astype(jnp.float32)         # (1, 128)
    v_feat = (wf_f @ params["feat_w"]).astype(jnp.float32)         # (1, F)
    v_stat = (wf_s @ params["stat_w"])[0]                          # (3,)
    bias = (wf_t @ params["time_b"] + wf_f @ params["feat_b"]
            + wf_s @ params["stat_b"] + params["fin_b"])           # (1,)
    scal = jnp.concatenate([v_stat[:2], bias]).astype(jnp.float32)  # (3,) SMEM
    v_feat_col = v_feat.reshape(F, 1)

    # valid interior lanes of the window-5 rolling mean, folded with
    # v_stat_res / K so the kernel needs a single multiply.
    lane = jnp.arange(L)
    valid = ((lane >= 2) & (lane <= L - 3)).astype(jnp.float32)
    res_w = (valid * (v_stat[2] / K)).reshape(1, L).astype(jnp.float32)

    # --- lane-dense output layout --------------------------------------------
    if 128 % L == 0 and (C2 * K * L) % 128 == 0:
        out_c = 128                     # full 128-lane unmasked stores
    else:
        out_c = L                       # fallback (reshape below stays free)
    out_r = (C2 * K * L) // out_c
    rep_mat = (jnp.arange(out_c)[None, :] % L
               == jnp.arange(L)[:, None]).astype(jnp.float32)      # (L, out_c)

    # one input instead of two tiny per-step DMAs.
    obsmask = jnp.concatenate([observed_data, target_mask], axis=1)  # (B,2K,L)

    nb = _pick_batches_per_step(B, K, L, F, out_r, out_c)
    grid = (B // nb,)

    in_specs = [
        pl.BlockSpec((nb, 2 * K, L), lambda i: (i, 0, 0)),   # obs ++ tmask
        pl.BlockSpec((nb, L, te_in), lambda i: (i, 0, 0)),   # time_embed
        pl.BlockSpec((nb, F, L), lambda i: (i, 0, 0)),       # feature_embed
        pl.BlockSpec((1, te_in), lambda i: (0, 0)),          # v_time  (const)
        pl.BlockSpec((F, 1), lambda i: (0, 0)),              # v_feat  (const)
        pl.BlockSpec((1, L), lambda i: (0, 0)),              # res_w   (const)
        pl.BlockSpec((L, out_c), lambda i: (0, 0)),          # rep_mat (const)
        pl.BlockSpec(memory_space=pltpu.MemorySpace.SMEM),   # folded scalars
    ]
    out_spec = pl.BlockSpec((nb, out_r, out_c), lambda i: (i, 0, 0))

    # cheap, memory-light kernel: tell XLA so it can overlap it.
    bytes_accessed = 4 * (obsmask.size + time_embed.size + feature_embed.size
                          + v_time.size + v_feat_col.size + res_w.size
                          + rep_mat.size + scal.size + B * out_r * out_c)
    flops = B * (8 * K * L            # stats + residual reductions
                 + 2 * L * te_in      # folded time projection
                 + 2 * F * L          # folded feature projection
                 + 2 * L * out_c      # lane replication dot
                 + 16 * L)            # rolls / combine
    cost = pl.CostEstimate(flops=int(flops), transcendentals=int(2 * B * L),
                           bytes_accessed=int(bytes_accessed))

    out = pl.pallas_call(
        _condition_mask_kernel,
        out_shape=jax.ShapeDtypeStruct((B, out_r, out_c), jnp.float32),
        grid_spec=pltpu.PrefetchScalarGridSpec(
            num_scalar_prefetch=0,
            grid=grid,
            in_specs=in_specs,
            out_specs=out_spec),
        compiler_params=pltpu.CompilerParams(
            dimension_semantics=("parallel",)),
        cost_estimate=cost,
    )(obsmask, time_embed, feature_embed, v_time, v_feat_col, res_w, rep_mat,
      scal)

    # Free reshape: (B, out_r, out_c) and (B, C2, K, L) share the same
    # row-major order (values depend only on (b, l), and L divides out_c).
    return out.reshape(B, C2, K, L)


# ------------------------- pure-JAX reference (check) ------------------------ #
def condition_mask_reference(observed_data, target_mask, time_embed,
                             feature_embed, params, *, channels=16):
    B, K, L = observed_data.shape
    masked = observed_data * target_mask
    denom = target_mask.sum(axis=1, keepdims=True) + 1e-8
    mean_local = masked.sum(axis=1, keepdims=True) / denom
    std_local = jnp.sqrt(((masked - mean_local) ** 2).sum(axis=1, keepdims=True) / denom)

    w = 5
    windows = jnp.stack([observed_data[:, :, i:i + w] for i in range(L - w + 1)], axis=2)
    rolling_mean = windows.mean(axis=-1)                                  # (B,K,L-4)
    residual_mid = observed_data[:, :, 2:L - 2] - rolling_mean
    residual = jnp.concatenate(
        [jnp.zeros((B, K, 2)), residual_mid, jnp.zeros((B, K, 2))], axis=-1)
    residual_mean = residual.mean(axis=1, keepdims=True)

    xt = time_embed @ params["time_w"].T + params["time_b"]               # (B,L,128)
    xf = jnp.transpose(feature_embed, (0, 2, 1)) @ params["feat_w"].T + params["feat_b"]
    stats = jnp.concatenate([mean_local, std_local, residual_mean], axis=1)  # (B,3,L)
    sp = jnp.transpose(stats, (0, 2, 1)) @ params["stat_w"].T + params["stat_b"]
    combined = jnp.concatenate([xt, xf, sp], axis=-1)                     # (B,L,272)
    scalar = (combined @ params["fin_w"].T + params["fin_b"])[..., 0]     # (B,L)
    return jnp.broadcast_to(scalar[:, None, None, :], (B, 2 * channels, K, L))


# ---------------------------------- main ------------------------------------ #
if __name__ == "__main__":
    # Module hyper-params: 2*time_emb_dim + feature_emb_dim must equal 272.
    time_emb_dim, feature_emb_dim = 128, 16
    num_feature, channels = 8, 16
    B, K, L = 2, 4, 16

    key = jax.random.PRNGKey(0)
    ks = jax.random.split(key, 14)

    observed_data = jax.random.normal(ks[0], (B, K, L), jnp.float32)
    x_mask = (jax.random.uniform(ks[1], (B, K, L)) > 0.3).astype(jnp.float32)
    cond_mask = (jax.random.uniform(ks[2], (B, K, L)) > 0.5).astype(jnp.float32)
    target_mask = (jax.random.uniform(ks[3], (B, K, L)) > 0.4).astype(jnp.float32)
    time_embed = jax.random.normal(ks[4], (B, L, 128), jnp.float32)
    feature_embed = jax.random.normal(ks[5], (B, num_feature, L), jnp.float32)

    scale = 0.05
    params = {
        "stat_w": scale * jax.random.normal(ks[6], (time_emb_dim, 3), jnp.float32),
        "stat_b": scale * jax.random.normal(ks[7], (time_emb_dim,), jnp.float32),
        "time_w": scale * jax.random.normal(ks[8], (time_emb_dim, 128), jnp.float32),
        "time_b": scale * jax.random.normal(ks[9], (time_emb_dim,), jnp.float32),
        "feat_w": scale * jax.random.normal(ks[10], (feature_emb_dim, num_feature), jnp.float32),
        "feat_b": scale * jax.random.normal(ks[11], (feature_emb_dim,), jnp.float32),
        "fin_w": scale * jax.random.normal(ks[12], (1, 272), jnp.float32),
        "fin_b": scale * jax.random.normal(ks[13], (1,), jnp.float32),
    }

    out = condition_mask_forward(observed_data, x_mask, cond_mask, target_mask,
                                 time_embed, feature_embed, params,
                                 channels=channels)
    out = jax.block_until_ready(out)

    ref = condition_mask_reference(observed_data, target_mask, time_embed,
                                   feature_embed, params, channels=channels)
    assert out.shape == (B, 2 * channels, K, L)
    assert jnp.allclose(out, ref, atol=1e-3, rtol=1e-3), "mismatch vs reference"

    print("KERNEL_OK")
</pallas_src>

<mosaic_0001>
module attributes {stable_mosaic.version = 11 : i64} {
  func.func @_condition_mask_kernel(%arg0: i32, %arg1: memref<2x8x16xf32, #tpu.memory_space<vmem>>, %arg2: memref<2x16x128xf32, #tpu.memory_space<vmem>>, %arg3: memref<2x8x16xf32, #tpu.memory_space<vmem>>, %arg4: memref<1x128xf32, #tpu.memory_space<vmem>>, %arg5: memref<8x1xf32, #tpu.memory_space<vmem>>, %arg6: memref<1x16xf32, #tpu.memory_space<vmem>>, %arg7: memref<16x128xf32, #tpu.memory_space<vmem>>, %arg8: memref<3xf32, #tpu.memory_space<smem>>, %arg9: memref<2x16x128xf32, #tpu.memory_space<vmem>>) attributes {dimension_semantics = [#tpu.dimension_semantics<parallel>], iteration_bounds = array<i64: 1>, scalar_prefetch = 0 : i64, scratch_operands = 0 : i64, tpu.core_type = #tpu.core_type<tc>, window_params = [{transform_indices = @transform_0, window_bounds = array<i64: 2, 8, 16>}, {transform_indices = @transform_1, window_bounds = array<i64: 2, 16, 128>}, {transform_indices = @transform_2, window_bounds = array<i64: 2, 8, 16>}, {pipeline_mode = #tpu.pipeline_mode<synchronous>, transform_indices = @transform_3, window_bounds = array<i64: 1, 128>}, {pipeline_mode = #tpu.pipeline_mode<synchronous>, transform_indices = @transform_4, window_bounds = array<i64: 8, 1>}, {pipeline_mode = #tpu.pipeline_mode<synchronous>, transform_indices = @transform_5, window_bounds = array<i64: 1, 16>}, {pipeline_mode = #tpu.pipeline_mode<synchronous>, transform_indices = @transform_6, window_bounds = array<i64: 16, 128>}, {transform_indices = @transform_7, window_bounds = array<i64: 3>}, {transform_indices = @transform_8, window_bounds = array<i64: 2, 16, 128>}]} {
    %c0 = arith.constant 0 : index
    %c0_0 = arith.constant 0 : index
    %c0_1 = arith.constant 0 : index
    %0 = vector.load %arg1[%c0, %c0_0, %c0_1] : memref<2x8x16xf32, #tpu.memory_space<vmem>>, vector<2x4x16xf32>
    %c0_2 = arith.constant 0 : index
    %c4 = arith.constant 4 : index
    %c0_3 = arith.constant 0 : index
    %1 = vector.load %arg1[%c0_2, %c4, %c0_3] : memref<2x8x16xf32, #tpu.memory_space<vmem>>, vector<2x4x16xf32>
    %c0_4 = arith.constant 0 : index
    %2 = memref.load %arg8[%c0_4] : memref<3xf32, #tpu.memory_space<smem>>
    %c1 = arith.constant 1 : index
    %3 = memref.load %arg8[%c1] : memref<3xf32, #tpu.memory_space<smem>>
    %c2 = arith.constant 2 : index
    %4 = memref.load %arg8[%c2] : memref<3xf32, #tpu.memory_space<smem>>
    %cst = arith.constant dense<0.000000e+00> : vector<2x16xf32>
    %5 = vector.multi_reduction <add>, %1, %cst [1] : vector<2x4x16xf32> to vector<2x16xf32>
    %cst_5 = arith.constant 9.99999993E-9 : f32
    %6 = vector.broadcast %cst_5 : f32 to vector<2x16xf32>
    %7 = arith.addf %5, %6 : vector<2x16xf32>
    %8 = arith.mulf %0, %1 : vector<2x4x16xf32>
    %cst_6 = arith.constant dense<0.000000e+00> : vector<2x16xf32>
    %9 = vector.multi_reduction <add>, %8, %cst_6 [1] : vector<2x4x16xf32> to vector<2x16xf32>
    %10 = arith.divf %9, %7 : vector<2x16xf32>
    %11 = vector.shape_cast %10 : vector<2x16xf32> to vector<2x1x16xf32>
    %12 = vector.broadcast %11 : vector<2x1x16xf32> to vector<2x4x16xf32>
    %13 = arith.subf %8, %12 : vector<2x4x16xf32>
    %14 = arith.mulf %13, %13 : vector<2x4x16xf32>
    %cst_7 = arith.constant dense<0.000000e+00> : vector<2x16xf32>
    %15 = vector.multi_reduction <add>, %14, %cst_7 [1] : vector<2x4x16xf32> to vector<2x16xf32>
    %16 = arith.divf %15, %7 : vector<2x16xf32>
    %17 = math.sqrt %16 : vector<2x16xf32>
    %cst_8 = arith.constant dense<0.000000e+00> : vector<2x16xf32>
    %18 = vector.multi_reduction <add>, %0, %cst_8 [1] : vector<2x4x16xf32> to vector<2x16xf32>
    %c1_i32 = arith.constant 1 : i32
    %19 = tpu.dynamic_rotate %18 by %c1_i32 dim 1 : vector<2x16xf32>, i32 -> vector<2x16xf32>
    %20 = arith.addf %18, %19 : vector<2x16xf32>
    %c2_i32 = arith.constant 2 : i32
    %21 = tpu.dynamic_rotate %18 by %c2_i32 dim 1 : vector<2x16xf32>, i32 -> vector<2x16xf32>
    %22 = arith.addf %20, %21 : vector<2x16xf32>
    %c15_i32 = arith.constant 15 : i32
    %23 = tpu.dynamic_rotate %18 by %c15_i32 dim 1 : vector<2x16xf32>, i32 -> vector<2x16xf32>
    %24 = arith.addf %22, %23 : vector<2x16xf32>
    %c14_i32 = arith.constant 14 : i32
    %25 = tpu.dynamic_rotate %18 by %c14_i32 dim 1 : vector<2x16xf32>, i32 -> vector<2x16xf32>
    %26 = arith.addf %24, %25 : vector<2x16xf32>
    %c0_9 = arith.constant 0 : index
    %c0_10 = arith.constant 0 : index
    %27 = vector.load %arg6[%c0_9, %c0_10] : memref<1x16xf32, #tpu.memory_space<vmem>>, vector<1x16xf32>
    %cst_11 = arith.constant 2.000000e-01 : f32
    %28 = vector.broadcast %cst_11 : f32 to vector<2x16xf32>
    %29 = arith.mulf %28, %26 : vector<2x16xf32>
    %30 = arith.subf %18, %29 : vector<2x16xf32>
    %31 = vector.broadcast %27 : vector<1x16xf32> to vector<2x16xf32>
    %32 = arith.mulf %31, %30 : vector<2x16xf32>
    %c0_12 = arith.constant 0 : index
    %c0_13 = arith.constant 0 : index
    %c0_14 = arith.constant 0 : index
    %33 = vector.load %arg2[%c0_12, %c0_13, %c0_14] : memref<2x16x128xf32, #tpu.memory_space<vmem>>, vector<2x16x128xf32>
    %c0_15 = arith.constant 0 : index
    %c0_16 = arith.constant 0 : index
    %34 = vector.load %arg4[%c0_15, %c0_16] : memref<1x128xf32, #tpu.memory_space<vmem>>, vector<1x128xf32>
    %35 = vector.shape_cast %34 : vector<1x128xf32> to vector<1x1x128xf32>
    %36 = vector.broadcast %35 : vector<1x1x128xf32> to vector<2x16x128xf32>
    %37 = arith.mulf %33, %36 : vector<2x16x128xf32>
    %cst_17 = arith.constant dense<0.000000e+00> : vector<2x16xf32>
    %38 = vector.multi_reduction <add>, %37, %cst_17 [2] : vector<2x16x128xf32> to vector<2x16xf32>
    %c0_18 = arith.constant 0 : index
    %c0_19 = arith.constant 0 : index
    %c0_20 = arith.constant 0 : index
    %39 = vector.load %arg3[%c0_18, %c0_19, %c0_20] : memref<2x8x16xf32, #tpu.memory_space<vmem>>, vector<2x8x16xf32>
    %c0_21 = arith.constant 0 : index
    %c0_22 = arith.constant 0 : index
    %40 = vector.load %arg5[%c0_21, %c0_22] : memref<8x1xf32, #tpu.memory_space<vmem>>, vector<8x1xf32>
    %41 = vector.shape_cast %40 : vector<8x1xf32> to vector<1x8x1xf32>
    %42 = vector.broadcast %41 : vector<1x8x1xf32> to vector<2x8x16xf32>
    %43 = arith.mulf %39, %42 : vector<2x8x16xf32>
    %cst_23 = arith.constant dense<0.000000e+00> : vector<2x16xf32>
    %44 = vector.multi_reduction <add>, %43, %cst_23 [1] : vector<2x8x16xf32> to vector<2x16xf32>
    %45 = arith.addf %38, %44 : vector<2x16xf32>
    %46 = vector.broadcast %2 : f32 to vector<2x16xf32>
    %47 = arith.mulf %46, %10 : vector<2x16xf32>
    %48 = arith.addf %45, %47 : vector<2x16xf32>
    %49 = vector.broadcast %3 : f32 to vector<2x16xf32>
    %50 = arith.mulf %49, %17 : vector<2x16xf32>
    %51 = arith.addf %48, %50 : vector<2x16xf32>
    %52 = arith.addf %51, %32 : vector<2x16xf32>
    %53 = vector.broadcast %4 : f32 to vector<2x16xf32>
    %54 = arith.addf %52, %53 : vector<2x16xf32>
    %c0_24 = arith.constant 0 : index
    %c0_25 = arith.constant 0 : index
    %55 = vector.load %arg7[%c0_24, %c0_25] : memref<16x128xf32, #tpu.memory_space<vmem>>, vector<16x128xf32>
    %cst_26 = arith.constant dense<0.000000e+00> : vector<2x128xf32>
    %56 = tpu.matmul %54, %55, %cst_26 {dimension_numbers = #tpu.dot_dimension_numbers<[1], [0], [0], [1], [0, 0, 1, 1], [], []>} : vector<2x16xf32>, vector<16x128xf32>, vector<2x128xf32> -> vector<2x128xf32>
    %57 = vector.shape_cast %56 : vector<2x128xf32> to vector<2x1x128xf32>
    %58 = vector.shape_cast %57 : vector<2x1x128xf32> to vector<2x1x128xf32>
    %59 = vector.broadcast %58 : vector<2x1x128xf32> to vector<2x16x128xf32>
    %c0_27 = arith.constant 0 : index
    %c0_28 = arith.constant 0 : index
    %c0_29 = arith.constant 0 : index
    %60 = vector.load %arg9[%c0_27, %c0_28, %c0_29] : memref<2x16x128xf32, #tpu.memory_space<vmem>>, vector<2x16x128xf32>
    tpu.vector_store %arg9[%c0_27, %c0_28, %c0_29], %59 {strides = array<i32>} : memref<2x16x128xf32, #tpu.memory_space<vmem>>, vector<2x16x128xf32>,
    return
  }
  func.func @transform_0(%arg0: i32) -> (i32, i32, i32) {
    %c0_i32 = arith.constant 0 : i32
    %c0_i32_0 = arith.constant 0 : i32
    %c0_i32_1 = arith.constant 0 : i32
    return %arg0, %c0_i32, %c0_i32_0 : i32, i32, i32
  }
  func.func @transform_1(%arg0: i32) -> (i32, i32, i32) {
    %c0_i32 = arith.constant 0 : i32
    %c0_i32_0 = arith.constant 0 : i32
    %c0_i32_1 = arith.constant 0 : i32
    return %arg0, %c0_i32, %c0_i32_0 : i32, i32, i32
  }
  func.func @transform_2(%arg0: i32) -> (i32, i32, i32) {
    %c0_i32 = arith.constant 0 : i32
    %c0_i32_0 = arith.constant 0 : i32
    %c0_i32_1 = arith.constant 0 : i32
    return %arg0, %c0_i32, %c0_i32_0 : i32, i32, i32
  }
  func.func @transform_3(%arg0: i32) -> (i32, i32) {
    %c0_i32 = arith.constant 0 : i32
    %c0_i32_0 = arith.constant 0 : i32
    %c0_i32_1 = arith.constant 0 : i32
    return %c0_i32, %c0_i32_0 : i32, i32
  }
  func.func @transform_4(%arg0: i32) -> (i32, i32) {
    %c0_i32 = arith.constant 0 : i32
    %c0_i32_0 = arith.constant 0 : i32
    %c0_i32_1 = arith.constant 0 : i32
    return %c0_i32, %c0_i32_0 : i32, i32
  }
  func.func @transform_5(%arg0: i32) -> (i32, i32) {
    %c0_i32 = arith.constant 0 : i32
    %c0_i32_0 = arith.constant 0 : i32
    %c0_i32_1 = arith.constant 0 : i32
    return %c0_i32, %c0_i32_0 : i32, i32
  }
  func.func @transform_6(%arg0: i32) -> (i32, i32) {
    %c0_i32 = arith.constant 0 : i32
    %c0_i32_0 = arith.constant 0 : i32
    %c0_i32_1 = arith.constant 0 : i32
    return %c0_i32, %c0_i32_0 : i32, i32
  }
  func.func @transform_7(%arg0: i32) -> i32 {
    %c0_i32 = arith.constant 0 : i32
    %c0_i32_0 = arith.constant 0 : i32
    return %c0_i32 : i32
  }
  func.func @transform_8(%arg0: i32) -> (i32, i32, i32) {
    %c0_i32 = arith.constant 0 : i32
    %c0_i32_0 = arith.constant 0 : i32
    %c0_i32_1 = arith.constant 0 : i32
    return %arg0, %c0_i32, %c0_i32_0 : i32, i32, i32
  }
}

</mosaic_0001>

<bundles_post_ra>
// kernel: tpu_custom_call.1
= control target key start
LH: loop header
LB: loop body
LE: loop exit
PB: predicated region body
PF: predicated region fallthrough
CT: control target
= control target key end

     0   :  { %13 = vsyncpa [#allocation3], 0  ;;  %s928_s0 = inlined_call_operand.hbm [shape: f32[2,8,16], index: 0, kind: input, shape index: {}]   ;;  %s929_s1 = inlined_call_operand.hbm [shape: f32[2,16,128], index: 1, kind: input, shape index: {}]   ;;  %s930_s2 = inlined_call_operand.hbm [shape: f32[2,8,16], index: 2, kind: input, shape index: {}]   ;;  %s931_s3 = inlined_call_operand.vmem [shape: f32[1,128], index: 3, kind: input, shape index: {}]   ;;  %s932_s4 = inlined_call_operand.vmem [shape: f32[8,1], index: 4, kind: input, shape index: {}]   ;;  %s933_s5 = inlined_call_operand.vmem [shape: f32[1,16], index: 5, kind: input, shape index: {}]   ;;  %s934_s6 = inlined_call_operand.hbm [shape: f32[16,128], index: 6, kind: input, shape index: {}]   ;;  %s935_s7 = inlined_call_operand.vmem [shape: f32[3], index: 7, kind: input, shape index: {}]   ;;  %s936_s8 = inlined_call_operand.hbm [shape: f32[2,16,128], index: 8, kind: output, shape index: {}]  }
   0x1   :  { %14 = vsyncpa [#allocation7], 0 }
   0x2   :  { %15 = vsyncpa [#allocation10], 0 }
   0x3   :  { %16 = vsyncpa [#allocation5], 0 }
   0x4   :  { %17 = vsyncpa [#allocation4], 0  ;;  %s35_s29 = sshll.u32 %s929_s1, 4  ;;  %s752_s30 = smov [#allocation6]   ;;  %s36_s29 = int_to_ptr.hbm [resolvable:$true] %s35_s29 }
   0x5   :  { %s37_s9 = sshll.u32 %s752_s30, 4  ;;  %s22_s12 = sshll.u32 %s928_s0, 4  ;;  %s38_s9 = int_to_ptr.vmem [resolvable:$true] %s37_s9  ;;  %s23_s12 = int_to_ptr.hbm [resolvable:$true] %s22_s12 }
   0x6   :  { %s753_s13 = smov 128   ;;  %s754_s14 = smov 8  }
   0x7   :  { %43 = dma.hbm_to_vmem [thread:$0]  %s36_s29, 512, %s38_s9, [#allocation7], %s753_s13, %s753_s13, %s754_s14  }
   0x8   :  { %s755_s15 = smov [#allocation2]   ;;  %s48_s1 = sshll.u32 %s930_s2, 4  ;;  %s49_s1 = int_to_ptr.hbm [resolvable:$true] %s48_s1 }
   0x9   :  { %s24_s16 = sshll.u32 %s755_s15, 4  ;;  %s67_s20 = sshll.u32 %s934_s6, 4  ;;  %s25_s16 = int_to_ptr.vmem [resolvable:$true] %s24_s16  ;;  %s68_s20 = int_to_ptr.hbm [resolvable:$true] %s67_s20 }
   0xa   :  { %30 = dma.hbm_to_vmem [thread:$0]  %s23_s12, 256, %s25_s16, [#allocation3], %s753_s13, %s753_s13, %s754_s14  }
   0xb   :  { %s756_s21 = smov [#allocation8]   ;;  %s757_s23 = smov [#allocation9]  }
   0xc   :  { %s50_s22 = sshll.u32 %s756_s21, 4  ;;  %s69_s2 = sshll.u32 %s757_s23, 4  ;;  %s51_s22 = int_to_ptr.vmem [resolvable:$true] %s50_s22  ;;  %s70_s2 = int_to_ptr.vmem [resolvable:$true] %s69_s2 }
   0xd   :  { %56 = dma.hbm_to_vmem [thread:$0]  %s49_s1, 256, %s51_s22, [#allocation7], %s753_s13, %s753_s13, %s754_s14  }
   0xe   :  { %s81_s26 = sshll.u32 %s935_s7, 4  ;;  %s758_s6 = smov [#allocation11]   ;;  %s82_s26 = int_to_ptr.vmem [resolvable:$true] %s81_s26 }
   0xf   :  { %75 = dma.hbm_to_vmem [thread:$0]  %s68_s20, 256, %s70_s2, [#allocation10], %s753_s13, %s753_s13, %s754_s14  }
  0x10   :  { %84 = dma.vmem_to_smem %s82_s26, 16, %s758_s6, [#allocation5]  }
  0x11   :  { %742 = dma.done.wait [#allocation3], 256  }
  0x12   :  { %743 = vsyncadd [#allocation3], 4294967040 }
  0x13   :  { %744 = dma.done.wait [#allocation7], 768  }
  0x14   :  { %745 = vsyncadd [#allocation7], 4294966528 }
  0x15   :  { %746 = dma.done.wait [#allocation10], 256  }
  0x16   :  { %747 = vsyncadd [#allocation10], 4294967040 }
  0x17   :  { %748 = dma.done.wait [#allocation5], 16  }
  0x18   :  { %749 = vsyncadd [#allocation5], 4294967280 }
  0x19   :  { %105 = sfence }
  0x1a   :  { %v106_v0 = vld [vmem:[#allocation2] sm:$0xf]  ;;  %v838_v1 = vld [vmem:[#allocation2 + $0x8] sm:$0xf]  ;;  %vm113_vm0 = vcmask 125952   ;;  %vm236_vm1 = vcmask 1041409  }
  0x1b   :  { %v220_v2 = vsel %vm113_vm0, %v106_v0, 0.0  ;;  %v227_v3 = vsel %vm113_vm0, %v838_v1, 0.0  ;;  %s759_s7 = smov 16   ;;  %v316_v17 = vld [vmem:[%s932_s4] sm:$0xff]  ;;  %v294_v18 = vld [vmem:[#allocation6] sm:$0xff]  ;;  %v760_v20 = vmov 0  }
  0x1c   :  { %v221_v4 = vrot.slane %v220_v2, 4  ;;  %v228_v5 = vrot.slane %v227_v3, 4  ;;  %v856_v19 = vld [vmem:[%s931_s3] ss:$0 sm:$0xff]  ;;  %587 = vset.pattern.permute.xlu1 %v760_v20  ;;  %vm239_vm2 = vcmask 1047680   ;;  %s761_s3 = smov 126  }
  0x1d   :  { %319 = vperm.xlu1 %587, %v316_v17   ;;  %v302_v21 = vmul.f32 %v856_v19, %v294_v18  ;;  %v108_v24 = vld [vmem:[#allocation2 + $0x4] sm:$0xf]  ;;  %s762_s4 = smov 114   ;;  %s763_s9 = smov 113   ;;  %v109_v63 = vld [vmem:[#allocation2 + $0xc] sm:$0xf] }
  0x1e   :  { %v222_v6 = vadd.f32 %v221_v4, %v220_v2  ;;  %v229_v7 = vadd.f32 %v228_v5, %v227_v3  ;;  %v114_v25 = vsel %vm113_vm0, %v108_v24, 0.0  ;;  %v130_v33 = vmul.f32 %v108_v24, %v106_v0  ;;  %s764_s10 = smov 127   ;;  %s885_s11 = sld [smem:[#allocation11 + $0x1]] }
  0x1f   :  { %306 = vadd.xlane.f32.xlu2 %v302_v21  ;;  %v115_v26 = vrot.slane %v114_v25, 4  ;;  %v121_v0 = vsel %vm113_vm0, %v109_v63, 0.0  ;;  %vm324_vm11 = vcmask 130048   ;;  %s110_s12 = sld [smem:[#allocation11]]  ;;  %s765_s17 = smov [#allocation12]  }
  0x20   :  { %v223_v8 = vrot.slane %v222_v6, 2  ;;  %v230_v9 = vrot.slane %v229_v7, 2  ;;  %v132_v34 = vsel %vm113_vm0, %v130_v33, 0.0  ;;  %v122_v2 = vrot.slane %v121_v0, 4  ;;  %s552_s18 = sshll.u32 %s765_s17, 4  ;;  %s554_s19 = sshll.u32 %s936_s8, 4  ;;  %s553_s18 = int_to_ptr.vmem [resolvable:$true] %s552_s18  ;;  %s555_s19 = int_to_ptr.hbm [resolvable:$true] %s554_s19 }
  0x21   :  { %v116_v27 = vadd.f32 %v115_v26, %v114_v25  ;;  %v133_v36 = vrot.slane %v132_v34, 4 }
  0x22   :  { %v224_v10 = vadd.f32 %v223_v8, %v222_v6  ;;  %v231_v11 = vadd.f32 %v230_v9, %v229_v7  ;;  %v123_v4 = vadd.f32 %v122_v2, %v121_v0  ;;  %v341_v9 = vlaneseq }
  0x23   :  { %v117_v28 = vrot.slane %v116_v27, 2  ;;  %v134_v38 = vadd.f32 %v133_v36, %v132_v34 }
  0x24   :  { %v225_v12 = vrot.slane %v224_v10, 1  ;;  %v232_v13 = vrot.slane %v231_v11, 1  ;;  %v124_v5 = vrot.slane %v123_v4, 2 }
  0x25   :  { %v118_v29 = vadd.f32 %v117_v28, %v116_v27  ;;  %v135_v40 = vrot.slane %v134_v38, 2 }
  0x26   :  { %v843_v14 = vadd.f32 %v225_v12, %v224_v10  ;;  %v845_v15 = vadd.f32 %v232_v13, %v231_v11  ;;  %v125_v7 = vadd.f32 %v124_v5, %v123_v4  ;;  %v873_v10 = vshrl.u32 %v341_v9, 7 }
  0x27   :  { %v119_v30 = vrot.slane %v118_v29, 1  ;;  %v136_v42 = vadd.f32 %v135_v40, %v134_v38  ;;  %v314_v40 = vld [vmem:[#allocation8] sm:$0xff]  ;;  %v410_v5 = vstv %s885_s11 }
  0x28   :  { %v237_v16 = vsel %vm236_vm1, %v845_v15, %v843_v14  ;;  %v126_v8 = vrot.slane %v125_v7, 1  ;;  %591 = vset.pattern.permute.xlu0 %v873_v10  ;;  %588 = vset.pattern.permute.xlu2 %v873_v10 }
  0x29   :  { %240 = vrot.lane.b32.xlu0 %v237_v16, %s759_s7  ;;  %v120_v31 = vadd.f32 %v119_v30, %v118_v29  ;;  %v137_v46 = vrot.slane %v136_v42, 1  ;;  %589 = vset.pattern.permute.xlu1 %v873_v10  ;;  %v295_v29 = vld [vmem:[#allocation6 + $0x8] sm:$0xff] }
  0x2a   :  { %v127_v11 = vadd.f32 %v126_v8, %v125_v7  ;;  %v303_v36 = vmul.f32 %v856_v19, %v295_v29 }
  0x2b   :  { %v128_v32 = vadd.f32 1e-08, %v120_v31  ;;  %v138_v49 = vadd.f32 %v137_v46, %v136_v42  ;;  %v296_v46 = vld [vmem:[#allocation6 + $0x10] sm:$0xff] }
  0x2c   :  { %v129_v12 = vadd.f32 1e-08, %v127_v11 }
  0x2d   :  { %602 = vrcp.f32 %v128_v32  ;;  %vm151_vm3 = vweird.f32 %v128_v32  ;;  %v157_v43 = vand.u32 2147483648, %v128_v32  ;;  %v155_v45 = vand.u32 2147483647, %v128_v32 }
  0x2e   :  { %v172_v31 = vand.u32 2147483648, %v129_v12  ;;  %vm166_vm7 = vweird.f32 %v129_v12  ;;  %v170_v34 = vand.u32 2147483647, %v129_v12 }
  0x2f   :  { %v158_v47 = vor.u32 1.1754944e-38, %v157_v43  ;;  %vm156_vm6 = vcmp.eq.f32.partialorder %v155_v45, 8.507059e+37  ;;  %v315_v43 = vld [vmem:[#allocation8 + $0x8] sm:$0xff]  ;;  %v297_v45 = vld [vmem:[#allocation6 + $0x18] sm:$0xff] }
  0x30   :  { %vm171_vm10 = vcmp.eq.f32.partialorder %v170_v34, 8.507059e+37 }
  0x33   :  { %v603_v35 = vpop.eup %602 }
  0x34   :  { %v147_v37 = vmul.f32 %v603_v35, %v128_v32  ;;  %vm152_vm4 = vweird.f32 %v603_v35 }
  0x35   :  { %vm153_vm5 = vmor %vm151_vm3, %vm152_vm4 }
  0x36   :  { %v148_v39 = vsub.f32 1.0, %v147_v37 }
  0x38   :  { %v149_v41 = vmul.f32 %v603_v35, %v148_v39 }
  0x3a   :  { %v150_v44 = vadd.f32 %v603_v35, %v149_v41 }
  0x3c   :  { %v154_v48 = vsel %vm153_vm5, %v603_v35, %v150_v44  ;;  %v173_v35 = vor.u32 1.1754944e-38, %v172_v31 }
  0x3d   :  { %v159_v50 = vsel %vm156_vm6, %v158_v47, %v154_v48 }
  0x3e   :  { %v863_v51 = vmul.f32 %v159_v50, %v138_v49 }
  0x40   :  { %v176_v52 = vsub.f32 %v130_v33, %v863_v51 }
  0x42   :  { %v178_v53 = vmul.f32 %v176_v52, %v176_v52 }
  0x44   :  { %v180_v54 = vsel %vm113_vm0, %v178_v53, 0.0  ;;  %v305_v53 = vmul.f32 %v856_v19, %v297_v45 }
  0x45   :  { %v181_v56 = vrot.slane %v180_v54, 4 }
  0x47   :  { %v182_v58 = vadd.f32 %v181_v56, %v180_v54  ;;  %v304_v54 = vmul.f32 %v856_v19, %v296_v46 }
  0x49   :  { %v183_v60 = vrot.slane %v182_v58, 2 }
  0x4b   :  { %v184_v61 = vadd.f32 %v183_v60, %v182_v58 }
  0x4d   :  { %v185_v62 = vrot.slane %v184_v61, 1 }
  0x4f   :  { %v186_v3 = vadd.f32 %v185_v62, %v184_v61 }
  0x51   :  { %v869_v6 = vmul.f32 %v186_v3, %v159_v50 }
  0x53   :  { %604 = vrsqrt.f32 %v869_v6  ;;  %vm203_vm12 = vcmp.eq.f32.partialorder %v869_v6, inf  ;;  %v206_v19 = vand.u32 2147483648, %v869_v6  ;;  %vm205_vm13 = vcmp.eq.f32.partialorder %v869_v6, 0.0 }
  0x54   :  { %606 = vrcp.f32 %v129_v12 }
  0x59   :  { %v605_v13 = vpop.eup %604 }
  0x5a   :  { %v197_v18 = vmul.f32 %v605_v13, %v869_v6 }
  0x5c   :  { %v198_v25 = vmul.f32 %v605_v13, %v197_v18 }
  0x5e   :  { %v199_v32 = vmul.f32 0.5, %v198_v25 }
  0x60   :  { %v200_v41 = vsub.f32 1.5, %v199_v32 }
  0x62   :  { %v201_v50 = vmul.f32 %v605_v13, %v200_v41 }
  0x64   :  { %v202_v58 = vmul.f32 %v201_v50, %v869_v6 }
  0x8f   :  { %v320_v39 = vpop.permute.xlu1 %319 }
  0x90   :  { %v322_v47 = vmul.f32 %v320_v39, %v314_v40  ;;  %v323_v49 = vmul.f32 %v320_v39, %v315_v43 }
  0x9b   :  { %v241_v22 = vpop.permute.xlu0 %240 }
  0x9c   :  { %v242_v23 = vsel %vm239_vm2, %v241_v22, %v237_v16  ;;  %v607_v22 = vpop.eup %606 }
  0x9d   :  { %243 = vrot.lane.b32.xlu0 %v242_v23, %s759_s7  ;;  %v162_v24 = vmul.f32 %v607_v22, %v129_v12  ;;  %vm167_vm8 = vweird.f32 %v607_v22 }
  0x9e   :  { %vm168_vm9 = vmor %vm166_vm7, %vm167_vm8 }
  0x9f   :  { %v163_v27 = vsub.f32 1.0, %v162_v24 }
  0xa1   :  { %v164_v30 = vmul.f32 %v607_v22, %v163_v27 }
 0x10f   :  { %v244_v55 = vpop.permute.xlu0 %243 }
 0x110   :  { %v245_v57 = vsel %vm239_vm2, %v244_v55, %v237_v16  ;;  %v131_v16 = vmul.f32 %v109_v63, %v838_v1  ;;  %v165_v1 = vadd.f32 %v607_v22, %v164_v30  ;;  %v325_v55 = vsel %vm324_vm11, %v322_v47, 0.0 }
 0x111   :  { %272 = vrot.lane.b32.xlu1 %v245_v57, %s761_s3  ;;  %256 = vrot.lane.b32.xlu0 %v245_v57, %s762_s4  ;;  %v247_v59 = vrot.slane %v245_v57, 1  ;;  %v326_v60 = vrot.slane %v325_v55, 4  ;;  %v204_v63 = vsel %vm203_vm12, %v869_v6, %v202_v58 }
 0x112   :  { %248 = vrot.lane.b32.xlu2 %v245_v57, %s763_s9  ;;  %v139_v17 = vsel %vm113_vm0, %v131_v16, 0.0  ;;  %v169_v38 = vsel %vm168_vm9, %v607_v22, %v165_v1  ;;  %v207_v4 = vsel %vm205_vm13, %v206_v19, %v204_v63 }
 0x113   :  { %v140_v21 = vrot.slane %v139_v17, 4  ;;  %v174_v42 = vsel %vm171_vm10, %v173_v35, %v169_v38  ;;  %v327_v2 = vadd.f32 %v326_v60, %v325_v55  ;;  %v411_v11 = vmul.f32 %v410_v5, %v207_v4 }
 0x115   :  { %v141_v23 = vadd.f32 %v140_v21, %v139_v17  ;;  %v328_v8 = vrot.slane %v327_v2, 2  ;;  %v896_v21 = vadd.s32 8, %v873_v10 }
 0x117   :  { %v142_v26 = vrot.slane %v141_v23, 2 }
 0x119   :  { %274 = vrot.lane.b32.xlu0 %v247_v59, %s761_s3  ;;  %250 = vrot.lane.b32.xlu1 %v247_v59, %s763_s9  ;;  %v143_v28 = vadd.f32 %v142_v26, %v141_v23  ;;  %v373_v26 = vstv %s110_s12 }
 0x11a   :  { %264 = vrot.lane.b32.xlu2 %v245_v57, %s764_s10  ;;  %v332_v57 = vsel %vm324_vm11, %v323_v49, 0.0 }
 0x11b   :  { %v144_v33 = vrot.slane %v143_v28, 1  ;;  %v333_v62 = vrot.slane %v332_v57, 4 }
 0x11d   :  { %v145_v37 = vadd.f32 %v144_v33, %v143_v28  ;;  %v334_v3 = vadd.f32 %v333_v62, %v332_v57  ;;  %v374_v28 = vmul.f32 %v373_v26, %v863_v51  ;;  %v901_v33 = vpop.xlane.xlu2 %306 }
 0x11f   :  { %v175_v44 = vmul.f32 %v174_v42, %v145_v37  ;;  %v335_v12 = vrot.slane %v334_v3, 2 }
 0x121   :  { %266 = vrot.lane.b32.xlu1 %v247_v59, %s764_s10  ;;  %v177_v48 = vsub.f32 %v131_v16, %v175_v44  ;;  %v329_v16 = vadd.f32 %v328_v8, %v327_v2  ;;  %v336_v17 = vadd.f32 %v335_v12, %v334_v3  ;;  %v375_v31 = vmul.f32 %v373_v26, %v175_v44 }
 0x122   :  { %258 = vrot.lane.b32.xlu2 %v247_v59, %s762_s4 }
 0x123   :  { %v179_v52 = vmul.f32 %v177_v48, %v177_v48  ;;  %v330_v22 = vrot.slane %v329_v16, 1  ;;  %v337_v23 = vrot.slane %v336_v17, 1 }
 0x125   :  { %v187_v56 = vsel %vm113_vm0, %v179_v52, 0.0  ;;  %v331_v24 = vadd.f32 %v330_v22, %v329_v16  ;;  %v338_v25 = vadd.f32 %v337_v23, %v336_v17  ;;  %vm510_vm0 = vcmask 130112  }
 0x126   :  { %v188_v59 = vrot.slane %v187_v56, 4 }
 0x128   :  { %v189_v61 = vadd.f32 %v188_v59, %v187_v56  ;;  %v601_v59 = vld [vmem:[%s933_s5] ss:$0 sm:$0xff]  ;;  %s571_s5 = sld [smem:[#allocation11 + $0x2]] }
 0x12a   :  { %v190_v0 = vrot.slane %v189_v61, 2 }
 0x12c   :  { %v191_v7 = vadd.f32 %v190_v0, %v189_v61 }
 0x12e   :  { %v192_v13 = vrot.slane %v191_v7, 1 }
 0x130   :  { %v193_v18 = vadd.f32 %v192_v13, %v191_v7 }
 0x132   :  { %v195_v6 = vmul.f32 %v193_v18, %v174_v42 }
 0x134   :  { %608 = vrsqrt.f32 %v195_v6  ;;  %vm215_vm14 = vcmp.eq.f32.partialorder %v195_v6, inf  ;;  %v218_v51 = vand.u32 2147483648, %v195_v6  ;;  %vm217_vm15 = vcmp.eq.f32.partialorder %v195_v6, 0.0 }
 0x13a   :  { %v609_v27 = vpop.eup %608 }
 0x13b   :  { %v209_v29 = vmul.f32 %v609_v27, %v195_v6 }
 0x13d   :  { %v210_v30 = vmul.f32 %v609_v27, %v209_v29 }
 0x13f   :  { %v211_v32 = vmul.f32 0.5, %v210_v30 }
 0x141   :  { %v212_v1 = vsub.f32 1.5, %v211_v32 }
 0x143   :  { %308 = vadd.xlane.f32.xlu0 %v303_v36  ;;  %v213_v34 = vmul.f32 %v609_v27, %v212_v1 }
 0x145   :  { %v214_v36 = vmul.f32 %v213_v34, %v195_v6 }
 0x147   :  { %v216_v37 = vsel %vm215_vm14, %v195_v6, %v214_v36 }
 0x148   :  { %v219_v39 = vsel %vm217_vm15, %v218_v51, %v216_v37 }
 0x149   :  { %v412_v41 = vmul.f32 %v410_v5, %v219_v39 }
 0x14b   :  { %312 = vadd.xlane.f32.xlu2 %v305_v53  ;;  %310 = vadd.xlane.f32.xlu1 %v304_v54 }
 0x157   :  { %419 = vperm.xlu0 %591, %v411_v11  }
 0x15f   :  { %592 = vset.pattern.permute.xlu0 %v896_v21 }
 0x163   :  { %345 = vperm.xlu2 %588, %v331_v24  }
 0x164   :  { %357 = vperm.xlu1 %589, %v338_v25  }
 0x167   :  { %351 = vperm.xlu0 %592, %v331_v24  }
 0x16b   :  { %590 = vset.pattern.permute.xlu2 %v896_v21 }
 0x16c   :  { %382 = vperm.xlu1 %589, %v374_v28   ;;  %v249_v35 = vpop.permute.xlu2 %248 }
 0x16d   :  { %v254_v43 = vadd.f32 %v249_v35, %v843_v14 }
 0x173   :  { %363 = vperm.xlu2 %590, %v338_v25  }
 0x174   :  { %394 = vperm.xlu1 %589, %v375_v31   ;;  %v265_v40 = vpop.permute.xlu2 %264 }
 0x17b   :  { %388 = vperm.xlu2 %590, %v374_v28  }
 0x17c   :  { %593 = vset.pattern.permute.xlu1 %v896_v21  ;;  %v259_v48 = vpop.permute.xlu2 %258 }
 0x183   :  { %400 = vperm.xlu2 %590, %v375_v31   ;;  %v273_v38 = vpop.permute.xlu1 %272  ;;  %v257_v42 = vpop.permute.xlu0 %256 }
 0x184   :  { %425 = vperm.xlu1 %593, %v411_v11   ;;  %v262_v45 = vadd.f32 %v257_v42, %v254_v43  ;;  %v488_v42 = vld [vmem:[#allocation9 + $0x8] sm:$0xff]  ;;  %v487_v43 = vld [vmem:[#allocation9] sm:$0xff] }
 0x185   :  { %532 = vmatpush.msra.mxu0 %v488_v42 }
 0x186   :  { %v270_v47 = vadd.f32 %v265_v40, %v262_v45  ;;  %v506_v45 = vand.u32 127, %v341_v9 }
 0x187   :  { %533 = vmatpush.msra.mxu0 %v487_v43 }
 0x188   :  { %v278_v52 = vadd.f32 %v273_v38, %v270_v47 }
 0x18a   :  { %v281_v56 = vmul.f32 0.2, %v278_v52 }
 0x18b   :  { %594 = vset.pattern.permute.xlu2 %v873_v10  ;;  %v251_v44 = vpop.permute.xlu1 %250  ;;  %v275_v54 = vpop.permute.xlu0 %274 }
 0x18c   :  { %437 = vperm.xlu1 %593, %v412_v41   ;;  %v255_v46 = vadd.f32 %v251_v44, %v845_v15  ;;  %v283_v60 = vsub.f32 %v843_v14, %v281_v56 }
 0x18e   :  { %v263_v49 = vadd.f32 %v259_v48, %v255_v46  ;;  %v508_v46 = vadd.s32 4294967288, %v506_v45 }
 0x193   :  { %431 = vperm.xlu2 %594, %v412_v41   ;;  %v267_v50 = vpop.permute.xlu1 %266 }
 0x194   :  { %v271_v53 = vadd.f32 %v267_v50, %v263_v49  ;;  %595 = vset.pattern.permute.xlu1 %v873_v10 }
 0x196   :  { %v279_v55 = vadd.f32 %v275_v54, %v271_v53 }
 0x198   :  { %v282_v57 = vmul.f32 0.2, %v279_v55 }
 0x19a   :  { %v284_v58 = vsub.f32 %v845_v15, %v282_v57 }
 0x19c   :  { %v290_v61 = vrot.slane %v284_v58, 7 }
 0x19e   :  { %v291_v62 = vsel %vm236_vm1, %v290_v61, %v283_v60 }
 0x19f   :  { %v293_v19 = vmul.f32 %v601_v59, %v291_v62 }
 0x1a1   :  { %v448_v63 = vperm.slane %v293_v19, 0  ;;  %v461_v0 = vperm.slane %v293_v19, 1 }
 0x1a3   :  { %453 = vperm.xlu2 %594, %v448_v63   ;;  %466 = vperm.xlu1 %595, %v461_v0  }
 0x1a4   :  { %459 = vperm.xlu0 %592, %v448_v63  }
 0x1ab   :  { %596 = vset.pattern.permute.xlu2 %v896_v21  ;;  %597 = vset.pattern.permute.xlu1 %v760_v20  ;;  %v482_v21 = vstv %s571_s5 }
 0x1ac   :  { %599 = vset.pattern.permute.xlu0 %v760_v20 }
 0x1b3   :  { %472 = vperm.xlu2 %596, %v461_v0  }
 0x1b6   :  { %v309_v8 = vpop.xlane.xlu0 %308 }
 0x1bb   :  { %598 = vset.pattern.permute.xlu2 %v760_v20 }
 0x1be   :  { %v313_v15 = vpop.xlane.xlu2 %312  ;;  %v311_v2 = vpop.xlane.xlu1 %310 }
 0x1c6   :  { %v346_v14 = vpop.permute.xlu2 %345 }
 0x1c7   :  { %v369_v12 = vadd.f32 %v346_v14, %v901_v33 }
 0x1c9   :  { %v420_v17 = vpop.permute.xlu0 %419 }
 0x1ce   :  { %v364_v10 = vpop.permute.xlu2 %363 }
 0x1cf   :  { %v372_v24 = vadd.f32 %v364_v10, %v313_v15 }
 0x1d6   :  { %v389_v3 = vpop.permute.xlu2 %388  ;;  %v358_v4 = vpop.permute.xlu1 %357 }
 0x1d7   :  { %v371_v32 = vadd.f32 %v358_v4, %v311_v2 }
 0x1d9   :  { %v352_v27 = vpop.permute.xlu0 %351 }
 0x1da   :  { %v370_v31 = vadd.f32 %v352_v27, %v309_v8 }
 0x1dc   :  { %v407_v34 = vadd.f32 %v389_v3, %v370_v31 }
 0x1de   :  { %v401_v5 = vpop.permute.xlu2 %400  ;;  %v383_v7 = vpop.permute.xlu1 %382 }
 0x1df   :  { %v406_v16 = vadd.f32 %v383_v7, %v369_v12  ;;  %v409_v26 = vadd.f32 %v401_v5, %v372_v24 }
 0x1e1   :  { %v443_v18 = vadd.f32 %v420_v17, %v406_v16 }
 0x1e6   :  { %v395_v13 = vpop.permute.xlu1 %394 }
 0x1e7   :  { %v408_v1 = vadd.f32 %v395_v13, %v371_v32 }
 0x1ed   :  { %v432_v11 = vpop.permute.xlu2 %431 }
 0x1ee   :  { %v445_v35 = vadd.f32 %v432_v11, %v408_v1 }
 0x1f6   :  { %v426_v23 = vpop.permute.xlu1 %425 }
 0x1f7   :  { %v444_v36 = vadd.f32 %v426_v23, %v407_v34 }
 0x1fd   :  { %v454_v22 = vpop.permute.xlu2 %453 }
 0x1fe   :  { %v478_v20 = vadd.f32 %v454_v22, %v443_v18  ;;  %v438_v25 = vpop.permute.xlu1 %437 }
 0x1ff   :  { %v446_v28 = vadd.f32 %v438_v25, %v409_v26 }
 0x200   :  { %v483_v6 = vadd.f32 %v482_v21, %v478_v20 }
 0x202   :  { %494 = vperm.xlu1 %597, %v483_v6  }
 0x20d   :  { %v473_v29 = vpop.permute.xlu2 %472 }
 0x20e   :  { %v481_v30 = vadd.f32 %v473_v29, %v446_v28 }
 0x210   :  { %v486_v33 = vadd.f32 %v482_v21, %v481_v30 }
 0x212   :  { %503 = vperm.xlu1 %597, %v486_v33  }
 0x215   :  { %v467_v51 = vpop.permute.xlu1 %466 }
 0x216   :  { %v480_v37 = vadd.f32 %v467_v51, %v445_v35  ;;  %v460_v38 = vpop.permute.xlu0 %459 }
 0x217   :  { %v479_v39 = vadd.f32 %v460_v38, %v444_v36 }
 0x218   :  { %v485_v40 = vadd.f32 %v482_v21, %v480_v37 }
 0x219   :  { %v484_v41 = vadd.f32 %v482_v21, %v479_v39 }
 0x21a   :  { %500 = vperm.xlu0 %599, %v485_v40  }
 0x21b   :  { %497 = vperm.xlu2 %598, %v484_v41  }
 0x274   :  { %v495_v44 = vpop.permute.xlu1 %494 }
 0x275   :  { %v498_v47 = vpop.permute.xlu2 %497  ;;  %v507_v49 = vperm.slane %v495_v44, %v506_v45 }
 0x276   :  { %v509_v50 = vperm.slane %v498_v47, %v508_v46 }
 0x278   :  { %v511_v55 = vsel %vm510_vm0, %v509_v50, %v507_v49 }
 0x284   :  { %v504_v48 = vpop.permute.xlu1 %503 }
 0x285   :  { %v513_v53 = vperm.slane %v504_v48, %v508_v46 }
 0x28c   :  { %v501_v52 = vpop.permute.xlu0 %500 }
 0x28d   :  { %v512_v54 = vperm.slane %v501_v52, %v506_v45 }
 0x28f   :  { %v514_v56 = vsel %vm510_vm0, %v513_v53, %v512_v54 }
 0x290   :  { %v515_v57 = vsel %vm236_vm1, %v514_v56, %v511_v55 }
 0x291   :  { %572 = vmatmul.msk.f32.vlgmr.msra.gmra.mxu0 %vm324_vm11, %v515_v57 }
 0x30e   :  { %v535_v58 = vpop.f32.mrf.mxu0 }
 0x30f   :  { %v539_v59 = vrot.slane %v535_v58, 1  ;;  %v540_v60 = vperm.slane %v535_v58, 0 }
 0x311   :  { %v541_v9 = vperm.slane %v539_v59, 0  ;;  %544 = vst [vmem:[#allocation12] sm:$0xff] %v540_v60 }
 0x312   :  { %545 = vst [vmem:[#allocation12 + $0x8] sm:$0xff] %v540_v60 }
 0x313   :  { %546 = vst [vmem:[#allocation12 + $0x10] sm:$0xff] %v541_v9 }
 0x314   :  { %547 = vst [vmem:[#allocation12 + $0x18] sm:$0xff] %v541_v9 }
 0x315   :  { %560 = dma.vmem_to_hbm [thread:$0]  %s553_s18, 512, %s555_s19, [#allocation4], %s753_s13, %s753_s13, %s754_s14  }
 0x316   :  { %750 = dma.done.wait [#allocation4], 512  }
 0x317   :  { %751 = vsyncadd [#allocation4], 4294966784 }
 0x318   :  { %565 = vsyncpa [#allocation3], 1 }
 0x319   :  { %566 = vsyncpa [#allocation7], 1 }
 0x31a   :  { %567 = vsyncpa [#allocation10], 1 }
 0x31b   :  { %568 = vsyncpa [#allocation4], 1 }
 0x31c   :  { %569 = vsyncpa [#allocation5], 1 }

</bundles_post_ra>
